<compile_context>
chip_gen: v7x
topology: tpu7x:2x2x1
jax: 0.10.0
libtpu: 0.0.40
codegen_flags: <defaults>
</compile_context>

<pallas_src>
import functools

import jax
import jax.numpy as jnp
from jax.experimental import pallas as pl
from jax.experimental.pallas import tpu as pltpu

_LANE = 128
_SUBLANE_PACK = {4: 8, 2: 16, 1: 32}   # f32 / bf16 / int8 sublane packing


def _round_up(a, b):
    return ((a + b - 1) // b) * b


def _concat_pool_kernel(x_ref, out_ref, *, inv_hw):
    # x_ref: (tile_rows, HW) block.  Reduce the spatial (lane) axis in f32.
    x = x_ref[...].astype(jnp.float32)
    mx = jnp.max(x, axis=-1, keepdims=True)             # (T, 1)
    av = jnp.sum(x, axis=-1, keepdims=True) * inv_hw    # (T, 1), f32 accumulate
    both = jnp.concatenate([mx, av], axis=-1)           # (T, 2)
    # Lane-dense store: (2, T) with rows on the lane axis (cheap XLU transpose,
    # avoids masked width-1 vst on the output path).
    out_ref[...] = jnp.transpose(both, (1, 0)).astype(out_ref.dtype)


def adaptive_concat_pool2d(x):
    """AdaptiveConcatPool2d(sz=None) forward: (N, C, H, W) -> (N, 2C, 1, 1)."""
    n, c, h, w = x.shape
    rows = n * c
    hw = h * w
    dtype = x.dtype
    itemsize = jnp.dtype(dtype).itemsize
    pack = _SUBLANE_PACK.get(itemsize, 8)

    # ---- VMEM-budget-driven row tile -------------------------------------
    # Keep one input block <= ~6 MiB so the double-buffered input pipeline plus
    # f32 intermediates stay well inside v7x's 64 MiB VMEM (and trivially
    # inside v5e/v6e's 128 MiB).
    block_budget = 6 << 20
    row_bytes = hw * itemsize
    fit_rows = max(pack, block_budget // row_bytes)

    rows_pack = _round_up(rows, pack)
    if rows_pack <= min(fit_rows, 512):
        # Small problem: a single block covering the (sublane-padded) array.
        tile_rows = rows_pack
        rows_p = rows_pack
    else:
        # Tiled rows: tile must be a multiple of 128 so the lane-dense
        # (2, tile_rows) output block satisfies the (8, 128) constraint.
        tile_rows = min(2048, max(_LANE, (fit_rows // _LANE) * _LANE))
        # Prefer >= 2 grid steps so v7x's two TensorCores both get work.
        half = max(_LANE, _round_up((rows + 1) // 2, _LANE))
        tile_rows = min(tile_rows, half)
        rows_p = _round_up(rows, tile_rows)
    grid = (rows_p // tile_rows,)
    # TODO(synk): for very large H*W (row_bytes >> block budget) add a second
    # "arbitrary" grid axis over HW chunks with running max/sum VMEM scratch.

    x2d = x.reshape(rows, hw)
    if rows_p != rows:
        # Padded rows are reduced too (cheap) and sliced off below.
        x2d = jnp.pad(x2d, ((0, rows_p - rows), (0, 0)))

    out = pl.pallas_call(
        functools.partial(_concat_pool_kernel, inv_hw=1.0 / hw),
        out_shape=jax.ShapeDtypeStruct((2, rows_p), dtype),
        grid_spec=pltpu.PrefetchScalarGridSpec(
            num_scalar_prefetch=0,
            grid=grid,
            in_specs=[pl.BlockSpec((tile_rows, hw), lambda i: (i, 0))],
            out_specs=pl.BlockSpec((2, tile_rows), lambda i: (0, i)),
        ),
        compiler_params=pltpu.CompilerParams(
            dimension_semantics=("parallel",),
            vmem_limit_bytes=64 << 20,
        ),
    )(x2d)

    pooled = out[:, :rows].reshape(2, n, c)      # row 0 = max, row 1 = avg
    # Match torch.cat([maxpool, avgpool], dim=1): (N, 2C, 1, 1).
    return jnp.transpose(pooled, (1, 0, 2)).reshape(n, 2 * c, 1, 1)


if __name__ == "__main__":
    key = jax.random.PRNGKey(0)
    x = jax.random.normal(key, (2, 4, 16, 16), dtype=jnp.float32)

    out = adaptive_concat_pool2d(x)
    out = jax.block_until_ready(out)

    # Reference with the same semantics as the PyTorch module.
    ref = jnp.concatenate(
        [
            jnp.max(x, axis=(2, 3), keepdims=True),
            jnp.mean(x, axis=(2, 3), keepdims=True),
        ],
        axis=1,
    )
    assert out.shape == (2, 8, 1, 1), out.shape
    assert jnp.allclose(out, ref, atol=1e-6), "mismatch vs reference"

    print("KERNEL_OK")
</pallas_src>

<mosaic_0001>
module attributes {stable_mosaic.version = 11 : i64} {
  func.func @_concat_pool_kernel(%arg0: i32, %arg1: memref<8x256xf32, #tpu.memory_space<vmem>>, %arg2: memref<2x8xf32, #tpu.memory_space<vmem>>) attributes {dimension_semantics = [#tpu.dimension_semantics<parallel>], iteration_bounds = array<i64: 1>, scalar_prefetch = 0 : i64, scratch_operands = 0 : i64, tpu.core_type = #tpu.core_type<tc>, window_params = [{transform_indices = @transform_0, window_bounds = array<i64: 8, 256>}, {transform_indices = @transform_1, window_bounds = array<i64: 2, 8>}]} {
    %c0 = arith.constant 0 : index
    %c0_0 = arith.constant 0 : index
    %0 = vector.load %arg1[%c0, %c0_0] : memref<8x256xf32, #tpu.memory_space<vmem>>, vector<8x256xf32>
    %cst = arith.constant dense<0xFF800000> : vector<8xf32>
    %1 = vector.multi_reduction <maximumf>, %0, %cst [1] : vector<8x256xf32> to vector<8xf32>
    %2 = vector.shape_cast %1 : vector<8xf32> to vector<8x1xf32>
    %cst_1 = arith.constant dense<0.000000e+00> : vector<8xf32>
    %3 = vector.multi_reduction <add>, %0, %cst_1 [1] : vector<8x256xf32> to vector<8xf32>
    %4 = vector.shape_cast %3 : vector<8xf32> to vector<8x1xf32>
    %cst_2 = arith.constant 3.906250e-03 : f32
    %5 = vector.broadcast %cst_2 : f32 to vector<8x1xf32>
    %6 = arith.mulf %4, %5 : vector<8x1xf32>
    %7 = tpu.concatenate %2, %6 in 1 : vector<8x1xf32>, vector<8x1xf32> -> vector<8x2xf32>
    %8 = tpu.transpose %7, [1, 0] : vector<8x2xf32> -> vector<2x8xf32>
    %c0_3 = arith.constant 0 : index
    %c0_4 = arith.constant 0 : index
    %9 = vector.load %arg2[%c0_3, %c0_4] : memref<2x8xf32, #tpu.memory_space<vmem>>, vector<2x8xf32>
    tpu.vector_store %arg2[%c0_3, %c0_4], %8 {strides = array<i32>} : memref<2x8xf32, #tpu.memory_space<vmem>>, vector<2x8xf32>,
    return
  }
  func.func @transform_0(%arg0: i32) -> (i32, i32) {
    %c0_i32 = arith.constant 0 : i32
    %c0_i32_0 = arith.constant 0 : i32
    return %arg0, %c0_i32 : i32, i32
  }
  func.func @transform_1(%arg0: i32) -> (i32, i32) {
    %c0_i32 = arith.constant 0 : i32
    %c0_i32_0 = arith.constant 0 : i32
    return %c0_i32, %arg0 : i32, i32
  }
}

</mosaic_0001>

<bundles_post_ra>
// kernel: tpu_custom_call.1
= control target key start
LH: loop header
LB: loop body
LE: loop exit
PB: predicated region body
PF: predicated region fallthrough
CT: control target
= control target key end

     0   :  { %6 = vsyncpa [#allocation3], 0  ;;  %s168_s0 = inlined_call_operand.hbm [shape: f32[8,256], index: 0, kind: input, shape index: {}]   ;;  %s169_s1 = inlined_call_operand.hbm [shape: f32[2,8], index: 1, kind: output, shape index: {}]  }
   0x1   :  { %7 = vsyncpa [#allocation4], 0  ;;  %s132_s6 = smov [#allocation2]   ;;  %s84_s10 = scalar_lea.hbm %s168_s0, 256 }
   0x2   :  { %s14_s7 = sshll.u32 %s132_s6, 4  ;;  %p85_p0 = scmp.ne.s32.totalorder %s168_s0, %s84_s10  ;;  %s15_s7 = int_to_ptr.vmem [resolvable:$true] %s14_s7 }
   0x3   :  { %p88_p1 = scmp.lt.u32.totalorder %s84_s10, %s168_s0 }
   0x5   :  { %p90_p2 = pnand %p88_p1, %p85_p0 }
   0x7   :  { %93 = shalt.err (!%p90_p2)
}
   0x8   :  { %s94_s15 = scalar_lea.vmem %s15_s7, 256  ;;  %p99_p4 = scmp.lt.s32.totalorder %s15_s7, %s15_s7 }
   0x9   :  { %p95_p3 = scmp.ne.s32.totalorder %s15_s7, %s94_s15  ;;  %p100_p5 = scmp.lt.s32.totalorder %s94_s15, %s94_s15 }
   0xb   :  { %p101_p6 = por %p100_p5, %p99_p4 }
   0xd   :  { %p102_p7 = pnand %p101_p6, %p95_p3 }
   0xf   :  { %105 = shalt.err (!%p102_p7)
}
  0x10   :  { %17 = dma.hbm_to_vmem [thread:$0]  %s168_s0, 256, %s15_s7, [#allocation3]  }
  0x11   :  { %128 = dma.done.wait [#allocation3], 256  }
  0x12   :  { %129 = vsyncadd [#allocation3], 4294967040  ;;  %v21_v0 = vld [vmem:[#allocation2] sm:$0xff]  ;;  %v22_v1 = vld [vmem:[#allocation2 + $0x8] sm:$0xff]  ;;  %vm30_vm0 = vcmask 7168   ;;  %s133_s18 = smov [#allocation5]  }
  0x13   :  { %v26_v2 = vadd.f32 %v22_v1, %v21_v0  ;;  %v23_v3 = vmax.f32 %v21_v0, %v22_v1  ;;  %s72_s19 = sshll.u32 %s133_s18, 4  ;;  %vm64_vm1 = vcmask 58368   ;;  %s73_s19 = int_to_ptr.vmem [resolvable:$true] %s72_s19 }
  0x14   :  { %s106_s0 = scalar_lea.vmem %s73_s19, 32  ;;  %p111_p9 = scmp.lt.s32.totalorder %s73_s19, %s73_s19 }
  0x15   :  { %27 = vadd.xlane.f32.xlu0 %v26_v2  ;;  %p107_p8 = scmp.ne.s32.totalorder %s73_s19, %s106_s0  ;;  %p112_p10 = scmp.lt.s32.totalorder %s106_s0, %s106_s0 }
  0x17   :  { %p113_p11 = por %p112_p10, %p111_p9 }
  0x19   :  { %24 = vmax.xlane.f32.xlu0 %v23_v3  ;;  %p114_p12 = pnand %p113_p11, %p107_p8 }
  0xa2   :  { %v28_v4 = vpop.xlane.xlu0 %27 }
  0xa3   :  { %v29_v5 = vmul.f32 0.00390625, %v28_v4 }
  0xa6   :  { %v25_v6 = vpop.xlane.xlu0 %24 }
  0xa7   :  { %v31_v7 = vsel %vm30_vm0, %v25_v6, %v29_v5 }
  0xa8   :  { %32 = vxpose.xlu1.b32.start.end [1/1] (short) (narrow) %v31_v7, 8 }
 0x128   :  { %v48_v8 = vpop.trf.xlu1 }
 0x129   :  { %65 = vst.msk [vmem:[#allocation5] sm:$0x3] %vm64_vm1, %v48_v8 }
 0x12a   :  { %117 = shalt.err (!%p114_p12)
}
 0x12b   :  { %s118_s22 = scalar_lea.hbm %s169_s1, 32 }
 0x12c   :  { %p119_p13 = scmp.ne.s32.totalorder %s169_s1, %s118_s22  ;;  %p122_p0 = scmp.lt.u32.totalorder %s118_s22, %s169_s1 }
 0x12e   :  { %p124_p1 = pnand %p122_p0, %p119_p13 }
 0x130   :  { %127 = shalt.err (!%p124_p1)
}
 0x131   :  { %75 = dma.vmem_to_hbm [thread:$0]  %s73_s19, 32, %s169_s1, [#allocation4]  }
 0x132   :  { %130 = dma.done.wait [#allocation4], 32  }
 0x133   :  { %131 = vsyncadd [#allocation4], 4294967264 }
 0x134   :  { %79 = vsyncpa [#allocation3], 1 }
 0x135   :  { %80 = vsyncpa [#allocation4], 1 }

</bundles_post_ra>
